<compile_context>
chip_gen: v7x
topology: tpu7x:2x2x1
jax: 0.10.0
libtpu: 0.0.40
codegen_flags: <defaults>
</compile_context>

<pallas_src>
import functools
import math

import jax
import jax.numpy as jnp
from jax.experimental import pallas as pl
from jax.experimental.pallas import tpu as pltpu


_LOG10_SCALE = 10.0 / math.log(10.0)   # 10*log10(x) == log(x) * _LOG10_SCALE


def _energy_kernel(x_ref, o_ref, *, hop, window, pad, n_frames, min_db, norm,
                   quantize_levels):
    """x_ref: (block_B, n_frames, hop) raw (unpadded) audio.
       o_ref: (block_B, n_frames) gain_db."""
    x = x_ref[...].astype(jnp.float32)
    xsq = x * x                                              # (bB, n, hop)

    if pad == 0:
        # window == hop: frames are exactly the hop blocks, no reflection.
        esum = jnp.sum(xsq, axis=-1)                         # (bB, n)
    else:
        # Per-block partial sums -- each sample is reduced exactly once on the
        # default config (2*pad == hop).
        head = jnp.sum(xsq[:, :, :pad], axis=-1)             # (bB, n)
        tail = jnp.sum(xsq[:, :, hop - pad:], axis=-1)       # (bB, n)
        if 2 * pad == hop:                                   # default 1024/512
            block = head + tail
        elif 2 * pad < hop:
            mid = jnp.sum(xsq[:, :, pad:hop - pad], axis=-1)
            block = head + mid + tail
        else:                                                # hop < 2*pad < 2*hop
            block = jnp.sum(xsq, axis=-1)

        # Fused reflect padding: reflected samples are audio[1:pad+1] (left)
        # and audio[T-pad-1:T-1] (right) in reversed order -- order does not
        # matter inside a sum, so just reduce the forward slices.
        left = jnp.sum(xsq[:, 0:1, 1:pad + 1], axis=-1)                        # (bB, 1)
        right = jnp.sum(xsq[:, n_frames - 1:n_frames, hop - pad - 1:hop - 1],
                        axis=-1)                                               # (bB, 1)

        # frame f = tail[f-1] + block[f] + head[f+1], with the reflected edge
        # sums standing in for tail[-1] / head[n_frames].
        if n_frames > 1:
            prev_tail = jnp.concatenate([left, tail[:, :-1]], axis=-1)         # (bB, n)
            next_head = jnp.concatenate([head[:, 1:], right], axis=-1)         # (bB, n)
        else:
            prev_tail, next_head = left, right
        esum = block + prev_tail + next_head

    energy = esum * jnp.float32(1.0 / window)
    min_gain = jnp.float32(10.0 ** (min_db / 10.0))
    gain = jnp.maximum(energy, min_gain)
    gain_db = jnp.log(gain) * jnp.float32(_LOG10_SCALE)      # 10*log10 on the EUP

    if norm:
        max_gain_db = jnp.max(gain_db, axis=-1, keepdims=True)
        denom = max_gain_db - jnp.float32(min_db) + jnp.float32(1e-8)
        gain_db = (gain_db - jnp.float32(min_db)) * pl.reciprocal(denom, approx=True)

    if quantize_levels is not None:
        q = jnp.float32(quantize_levels - 1)
        gain_db = jnp.round(gain_db * q) / q

    o_ref[...] = gain_db.astype(o_ref.dtype)


def energy_extractor(audio, *, hop_size=512, window_size=1024,
                     padding='reflect', min_db=-60.0, norm=True,
                     quantize_levels=None, vmem_block_bytes=4 << 20):
    """Pallas equivalent of EnergyExtractor.forward.

    audio: (B, T) float32.  Returns (B, n_frames, 1) gain_db.
    """
    if padding != 'reflect':
        raise NotImplementedError("only 'reflect' padding is implemented")
    B, T = audio.shape
    if T % hop_size != 0:
        raise ValueError("T must be a multiple of hop_size")
    if (window_size - hop_size) % 2 != 0:
        raise ValueError("(window_size - hop_size) must be even")
    pad = (window_size - hop_size) // 2
    if not (0 <= pad < hop_size):
        raise NotImplementedError("requires 0 <= (window-hop)/2 < hop")
    n_frames = T // hop_size

    # Free reshape of the contiguous audio -> tall, lane-dense kernel tile
    # (last two dims (n_frames, hop) = (8k, 4*128) for the default config).
    x3 = audio.astype(jnp.float32).reshape(B, n_frames, hop_size)

    # Row-block sizing: keep each (double-buffered) input block ~<= 4 MiB so it
    # fits comfortably on v5e/v6e/v7x scoped VMEM.  When tiling, row blocks are
    # multiples of 8 (sublane aligned) and B is zero-padded up to a multiple.
    bytes_per_row = n_frames * hop_size * 4
    rows_fit = max(1, vmem_block_bytes // bytes_per_row)
    if rows_fit >= B:
        block_b, b_padded = B, B
    else:
        block_b = max(8, (rows_fit // 8) * 8)
        b_padded = ((B + block_b - 1) // block_b) * block_b
        if b_padded != B:
            x3 = jnp.pad(x3, ((0, b_padded - B), (0, 0), (0, 0)))
    # TODO(synk): for extremely long single rows (per-row audio >> VMEM budget)
    # add frame-axis tiling with a one-hop halo and a running-max finalize pass
    # for the norm; not needed for typical clip lengths.

    kernel = functools.partial(
        _energy_kernel, hop=hop_size, window=window_size, pad=pad,
        n_frames=n_frames, min_db=float(min_db), norm=norm,
        quantize_levels=quantize_levels)

    gain_db = pl.pallas_call(
        kernel,
        out_shape=jax.ShapeDtypeStruct((b_padded, n_frames), jnp.float32),
        grid=(b_padded // block_b,),
        in_specs=[pl.BlockSpec((block_b, n_frames, hop_size),
                               lambda i: (i, 0, 0))],
        out_specs=pl.BlockSpec((block_b, n_frames), lambda i: (i, 0)),
        compiler_params=pltpu.CompilerParams(
            dimension_semantics=("parallel",),
            vmem_limit_bytes=32 * 1024 * 1024),
    )(x3)

    return gain_db[:B, :, None]  # (B, n_frames, 1)


def _reference(audio, *, hop_size=512, window_size=1024, min_db=-60.0,
               norm=True, quantize_levels=None):
    """Pure-JAX reference mirroring the PyTorch forward (for self-check)."""
    B, T = audio.shape
    n_frames = T // hop_size
    pad = (window_size - hop_size) // 2
    ap = jnp.pad(audio, ((0, 0), (pad, pad)), mode='reflect')
    asq = ap ** 2
    frames = jnp.stack(
        [asq[:, f * hop_size: f * hop_size + window_size]
         for f in range(n_frames)], axis=1)          # (B, n_frames, window)
    energy = frames.mean(axis=-1)                    # (B, n_frames)
    gain = jnp.maximum(energy, 10.0 ** (min_db / 10.0))
    gain_db = 10.0 * jnp.log10(gain)
    if norm:
        max_db = jnp.max(gain_db, axis=-1, keepdims=True)
        gain_db = (gain_db - min_db) / (max_db - min_db + 1e-8)
    if quantize_levels is not None:
        q = float(quantize_levels - 1)
        gain_db = jnp.round(gain_db * q) / q
    return gain_db[..., None]


if __name__ == "__main__":
    # Small shapes consistent with the module: B=2, T = 8 * hop_size.
    hop_size, window_size = 512, 1024
    B, n_frames = 2, 8
    T = n_frames * hop_size

    key = jax.random.PRNGKey(0)
    audio = 0.1 * jax.random.normal(key, (B, T), dtype=jnp.float32)

    # Default config (norm=True).  The kernel uses an approximate EUP
    # reciprocal for the normalisation divide -> slightly loose tolerance.
    out = jax.block_until_ready(
        energy_extractor(audio, hop_size=hop_size, window_size=window_size))
    ref = _reference(audio, hop_size=hop_size, window_size=window_size)
    assert out.shape == (B, n_frames, 1), out.shape
    assert jnp.allclose(out, ref, atol=5e-3, rtol=1e-3), (
        float(jnp.max(jnp.abs(out - ref))))

    # norm=False path (no approx reciprocal): tight check of the fused-pad
    # energy / clamp / log path.
    out2 = jax.block_until_ready(
        energy_extractor(audio, hop_size=hop_size, window_size=window_size,
                         norm=False))
    ref2 = _reference(audio, hop_size=hop_size, window_size=window_size,
                      norm=False)
    assert out2.shape == (B, n_frames, 1), out2.shape
    assert jnp.allclose(out2, ref2, atol=1e-3, rtol=1e-4), (
        float(jnp.max(jnp.abs(out2 - ref2))))

    print("KERNEL_OK")
</pallas_src>

<mosaic_0001>
module attributes {stable_mosaic.version = 11 : i64} {
  func.func @_energy_kernel(%arg0: i32, %arg1: memref<2x8x512xf32, #tpu.memory_space<vmem>>, %arg2: memref<2x8xf32, #tpu.memory_space<vmem>>) attributes {dimension_semantics = [#tpu.dimension_semantics<parallel>], iteration_bounds = array<i64: 1>, scalar_prefetch = 0 : i64, scratch_operands = 0 : i64, tpu.core_type = #tpu.core_type<tc>, window_params = [{transform_indices = @transform_0, window_bounds = array<i64: 2, 8, 512>}, {transform_indices = @transform_1, window_bounds = array<i64: 2, 8>}]} {
    %c0 = arith.constant 0 : index
    %c0_0 = arith.constant 0 : index
    %c0_1 = arith.constant 0 : index
    %0 = vector.load %arg1[%c0, %c0_0, %c0_1] : memref<2x8x512xf32, #tpu.memory_space<vmem>>, vector<2x8x512xf32>
    %1 = arith.mulf %0, %0 : vector<2x8x512xf32>
    %2 = vector.extract_strided_slice %1 {offsets = [0, 0, 0], sizes = [2, 8, 256], strides = [1, 1, 1]} : vector<2x8x512xf32> to vector<2x8x256xf32>
    %cst = arith.constant dense<0.000000e+00> : vector<2x8xf32>
    %3 = vector.multi_reduction <add>, %2, %cst [2] : vector<2x8x256xf32> to vector<2x8xf32>
    %4 = vector.extract_strided_slice %1 {offsets = [0, 0, 256], sizes = [2, 8, 256], strides = [1, 1, 1]} : vector<2x8x512xf32> to vector<2x8x256xf32>
    %cst_2 = arith.constant dense<0.000000e+00> : vector<2x8xf32>
    %5 = vector.multi_reduction <add>, %4, %cst_2 [2] : vector<2x8x256xf32> to vector<2x8xf32>
    %6 = arith.addf %3, %5 : vector<2x8xf32>
    %7 = vector.extract_strided_slice %1 {offsets = [0, 0, 1], sizes = [2, 1, 256], strides = [1, 1, 1]} : vector<2x8x512xf32> to vector<2x1x256xf32>
    %cst_3 = arith.constant dense<0.000000e+00> : vector<2x1xf32>
    %8 = vector.multi_reduction <add>, %7, %cst_3 [2] : vector<2x1x256xf32> to vector<2x1xf32>
    %9 = vector.extract_strided_slice %1 {offsets = [0, 7, 255], sizes = [2, 1, 256], strides = [1, 1, 1]} : vector<2x8x512xf32> to vector<2x1x256xf32>
    %cst_4 = arith.constant dense<0.000000e+00> : vector<2x1xf32>
    %10 = vector.multi_reduction <add>, %9, %cst_4 [2] : vector<2x1x256xf32> to vector<2x1xf32>
    %11 = vector.extract_strided_slice %5 {offsets = [0, 0], sizes = [2, 7], strides = [1, 1]} : vector<2x8xf32> to vector<2x7xf32>
    %12 = tpu.concatenate %8, %11 in 1 : vector<2x1xf32>, vector<2x7xf32> -> vector<2x8xf32>
    %13 = vector.extract_strided_slice %3 {offsets = [0, 1], sizes = [2, 7], strides = [1, 1]} : vector<2x8xf32> to vector<2x7xf32>
    %14 = tpu.concatenate %13, %10 in 1 : vector<2x7xf32>, vector<2x1xf32> -> vector<2x8xf32>
    %15 = arith.addf %6, %12 : vector<2x8xf32>
    %16 = arith.addf %15, %14 : vector<2x8xf32>
    %cst_5 = arith.constant 9.765625E-4 : f32
    %17 = vector.broadcast %cst_5 : f32 to vector<2x8xf32>
    %18 = arith.mulf %16, %17 : vector<2x8xf32>
    %cst_6 = arith.constant 9.99999997E-7 : f32
    %19 = vector.broadcast %cst_6 : f32 to vector<2x8xf32>
    %20 = arith.maximumf %18, %19 : vector<2x8xf32>
    %21 = math.log %20 : vector<2x8xf32>
    %cst_7 = arith.constant 4.34294462 : f32
    %22 = vector.broadcast %cst_7 : f32 to vector<2x8xf32>
    %23 = arith.mulf %21, %22 : vector<2x8xf32>
    %cst_8 = arith.constant dense<0xFF800000> : vector<2xf32>
    %24 = vector.multi_reduction <maximumf>, %23, %cst_8 [1] : vector<2x8xf32> to vector<2xf32>
    %25 = vector.shape_cast %24 : vector<2xf32> to vector<2x1xf32>
    %cst_9 = arith.constant -6.000000e+01 : f32
    %26 = vector.broadcast %cst_9 : f32 to vector<2x1xf32>
    %27 = arith.subf %25, %26 : vector<2x1xf32>
    %cst_10 = arith.constant 9.99999993E-9 : f32
    %28 = vector.broadcast %cst_10 : f32 to vector<2x1xf32>
    %29 = arith.addf %27, %28 : vector<2x1xf32>
    %cst_11 = arith.constant -6.000000e+01 : f32
    %30 = vector.broadcast %cst_11 : f32 to vector<2x8xf32>
    %31 = arith.subf %23, %30 : vector<2x8xf32>
    %32 = tpu.reciprocal %29 {approx = true} : vector<2x1xf32> -> vector<2x1xf32>
    %33 = vector.broadcast %32 : vector<2x1xf32> to vector<2x8xf32>
    %34 = arith.mulf %31, %33 : vector<2x8xf32>
    %c0_12 = arith.constant 0 : index
    %c0_13 = arith.constant 0 : index
    %35 = vector.load %arg2[%c0_12, %c0_13] : memref<2x8xf32, #tpu.memory_space<vmem>>, vector<2x8xf32>
    tpu.vector_store %arg2[%c0_12, %c0_13], %34 {strides = array<i32>} : memref<2x8xf32, #tpu.memory_space<vmem>>, vector<2x8xf32>,
    return
  }
  func.func @transform_0(%arg0: i32) -> (i32, i32, i32) {
    %c0_i32 = arith.constant 0 : i32
    %c0_i32_0 = arith.constant 0 : i32
    %c0_i32_1 = arith.constant 0 : i32
    return %arg0, %c0_i32, %c0_i32_0 : i32, i32, i32
  }
  func.func @transform_1(%arg0: i32) -> (i32, i32) {
    %c0_i32 = arith.constant 0 : i32
    %c0_i32_0 = arith.constant 0 : i32
    return %arg0, %c0_i32 : i32, i32
  }
}

</mosaic_0001>

<bundles_post_ra>
// kernel: tpu_custom_call.1
= control target key start
LH: loop header
LB: loop body
LE: loop exit
PB: predicated region body
PF: predicated region fallthrough
CT: control target
= control target key end

     0   :  { %6 = vsyncpa [#allocation3], 0  ;;  %s431_s0 = inlined_call_operand.hbm [shape: f32[2,8,512], index: 0, kind: input, shape index: {}]   ;;  %s432_s1 = inlined_call_operand.hbm [shape: f32[2,8], index: 1, kind: output, shape index: {}]  }
   0x1   :  { %7 = vsyncpa [#allocation4], 0  ;;  %s357_s6 = smov [#allocation2]   ;;  %s309_s10 = scalar_lea.hbm %s431_s0, 1024 }
   0x2   :  { %s13_s7 = sshll.u32 %s357_s6, 4  ;;  %p310_p0 = scmp.ne.s32.totalorder %s431_s0, %s309_s10  ;;  %s14_s7 = int_to_ptr.vmem [resolvable:$true] %s13_s7 }
   0x3   :  { %p313_p1 = scmp.lt.u32.totalorder %s309_s10, %s431_s0 }
   0x5   :  { %p315_p2 = pnand %p313_p1, %p310_p0 }
   0x7   :  { %318 = shalt.err (!%p315_p2)
}
   0x8   :  { %s319_s15 = scalar_lea.vmem %s14_s7, 1024  ;;  %p324_p4 = scmp.lt.s32.totalorder %s14_s7, %s14_s7 }
   0x9   :  { %p320_p3 = scmp.ne.s32.totalorder %s14_s7, %s319_s15  ;;  %p325_p5 = scmp.lt.s32.totalorder %s319_s15, %s319_s15 }
   0xb   :  { %p326_p6 = por %p325_p5, %p324_p4 }
   0xd   :  { %p327_p7 = pnand %p326_p6, %p320_p3 }
   0xf   :  { %330 = shalt.err (!%p327_p7)
}
  0x10   :  { %s358_s16 = smov 512   ;;  %s359_s17 = smov 32  }
  0x11   :  { %19 = dma.hbm_to_vmem [thread:$0]  %s431_s0, 1024, %s14_s7, [#allocation3], %s358_s16, %s358_s16, %s359_s17  }
  0x12   :  { %353 = dma.done.wait [#allocation3], 1024  }
  0x13   :  { %354 = vsyncadd [#allocation3], 4294966272  ;;  %v29_v0 = vld [vmem:[#allocation2 + $0x30] sm:$0xff]  ;;  %v27_v1 = vld [vmem:[#allocation2 + $0x20] sm:$0xff]  ;;  %s360_s20 = smov 127   ;;  %s361_s0 = smov 1   ;;  %v133_v52 = vlaneseq }
  0x14   :  { %v28_v2 = vld [vmem:[#allocation2 + $0x28] sm:$0xff]  ;;  %v37_v3 = vmul.f32 %v29_v0, %v29_v0  ;;  %v35_v4 = vmul.f32 %v27_v1, %v27_v1  ;;  %v23_v5 = vld [vmem:[#allocation2] sm:$0xff]  ;;  %v25_v9 = vld [vmem:[#allocation2 + $0x10] sm:$0xff]  ;;  %vm71_vm0 = vcmask 1039360   ;;  %vm80_vm1 = vcmask 1040384   ;;  %s363_s21 = smov [#allocation5]  }
  0x15   :  { %v36_v6 = vmul.f32 %v28_v2, %v28_v2  ;;  %v31_v7 = vmul.f32 %v23_v5, %v23_v5  ;;  %v24_v8 = vld [vmem:[#allocation2 + $0x8] sm:$0xff]  ;;  %v33_v11 = vmul.f32 %v25_v9, %v25_v9  ;;  %v26_v12 = vld [vmem:[#allocation2 + $0x18] sm:$0xff]  ;;  %vm105_vm2 = vcmask 7168   ;;  %s282_s22 = sshll.u32 %s363_s21, 4  ;;  %s283_s22 = int_to_ptr.vmem [resolvable:$true] %s282_s22 }
  0x16   :  { %69 = vrot.lane.b32.xlu1 %v37_v3, %s360_s20  ;;  %65 = vrot.lane.b32.xlu0 %v35_v4, %s360_s20  ;;  %v32_v10 = vmul.f32 %v24_v8, %v24_v8  ;;  %v34_v13 = vmul.f32 %v26_v12, %v26_v12  ;;  %v30_v14 = vld [vmem:[#allocation2 + $0x38] sm:$0xff]  ;;  %vm114_vm3 = vcmask 1047559   ;;  %v390_v54 = vand.u32 127, %v133_v52  ;;  %s331_s23 = scalar_lea.vmem %s283_s22, 32  ;;  %p336_p9 = scmp.lt.s32.totalorder %s283_s22, %s283_s22 }
  0x17   :  { %v38_v15 = vmul.f32 %v30_v14, %v30_v14  ;;  %v42_v19 = vadd.f32 %v36_v6, %v35_v4  ;;  %v393_v56 = vshrl.u32 %v133_v52, 7  ;;  %vm128_vm4 = vcmask 1041409   ;;  %p332_p8 = scmp.ne.s32.totalorder %s283_s22, %s331_s23  ;;  %p337_p10 = scmp.lt.s32.totalorder %s331_s23, %s331_s23 }
  0x18   :  { %v45_v16 = vadd.f32 %v34_v13, %v33_v11  ;;  %v39_v17 = vadd.f32 %v32_v10, %v31_v7  ;;  %v135_v55 = vadd.s32 4294967295, %v390_v54  ;;  %vm158_vm5 = vcmask 1042434  }
  0x19   :  { %v48_v18 = vadd.f32 %v38_v15, %v37_v3  ;;  %v397_v0 = vsub.s32 1, %v393_v56  ;;  %v172_v1 = vsub.s32 0, %v393_v56  ;;  %vm167_vm6 = vcmask 56320   ;;  %p338_p11 = por %p337_p10, %p336_p9 }
  0x1a   :  { %67 = vrot.lane.b32.xlu0 %v36_v6, %s360_s20  ;;  %59 = vrot.lane.b32.xlu1 %v31_v7, %s360_s20  ;;  %v138_v58 = vsub.s32 %v135_v55, %v393_v56  ;;  %vm235_vm7 = vcmask 58368  }
  0x1b   :  { %p339_p12 = pnand %p338_p11, %p332_p8 }
  0x1e   :  { %61 = vrot.lane.b32.xlu0 %v32_v10, %s360_s20  ;;  %63 = vrot.lane.b32.xlu1 %v33_v11, %s360_s20 }
  0x22   :  { %93 = vrot.lane.b32.xlu0 %v32_v10, %s361_s0  ;;  %95 = vrot.lane.b32.xlu1 %v33_v11, %s361_s0 }
  0x26   :  { %97 = vrot.lane.b32.xlu0 %v34_v13, %s361_s0  ;;  %99 = vrot.lane.b32.xlu1 %v36_v6, %s361_s0  ;;  %v149_v6 = vadd.s32 1, %v390_v54 }
  0x28   :  { %v152_v10 = vsub.s32 %v149_v6, %v393_v56 }
  0x2a   :  { %101 = vrot.lane.b32.xlu0 %v37_v3, %s361_s0  ;;  %103 = vrot.lane.b32.xlu1 %v38_v15, %s361_s0 }
  0x49   :  { %46 = vadd.xlane.f32.xlu0 %v45_v16 }
  0x4d   :  { %40 = vadd.xlane.f32.xlu0 %v39_v17 }
  0x4e   :  { %49 = vadd.xlane.f32.xlu1 %v48_v18 }
  0x52   :  { %43 = vadd.xlane.f32.xlu1 %v42_v19 }
  0x88   :  { %v70_v20 = vpop.permute.xlu1 %69  ;;  %v66_v21 = vpop.permute.xlu0 %65 }
  0x8c   :  { %v68_v22 = vpop.permute.xlu0 %67  ;;  %v60_v23 = vpop.permute.xlu1 %59 }
  0x8d   :  { %v74_v24 = vsel %vm71_vm0, %v66_v21, %v68_v22  ;;  %v75_v25 = vsel %vm71_vm0, %v68_v22, %v70_v20  ;;  %v198_v21 = vsub.s32 2, %v393_v56  ;;  %v362_v22 = vmov 0  }
  0x8e   :  { %v86_v26 = vsel %vm80_vm1, %v74_v24, 0.0  ;;  %v87_v27 = vsel %vm80_vm1, %v75_v25, 0.0  ;;  %301 = vset.pattern.permute.xlu0 %v362_v22  ;;  %302 = vset.pattern.permute.xlu1 %v362_v22 }
  0x8f   :  { %v88_v28 = vadd.f32 %v87_v27, %v86_v26 }
  0x90   :  { %v62_v29 = vpop.permute.xlu0 %61  ;;  %v64_v30 = vpop.permute.xlu1 %63 }
  0x91   :  { %v72_v31 = vsel %vm71_vm0, %v60_v23, %v62_v29  ;;  %v73_v32 = vsel %vm71_vm0, %v62_v29, %v64_v30  ;;  %89 = vadd.xlane.f32.xlu0 %v88_v28 }
  0x92   :  { %v81_v33 = vsel %vm80_vm1, %v72_v31, 0.0  ;;  %v82_v34 = vsel %vm80_vm1, %v73_v32, 0.0 }
  0x93   :  { %v83_v35 = vadd.f32 %v82_v34, %v81_v33 }
  0x94   :  { %v94_v36 = vpop.permute.xlu0 %93  ;;  %v96_v37 = vpop.permute.xlu1 %95 }
  0x95   :  { %84 = vadd.xlane.f32.xlu0 %v83_v35  ;;  %v106_v38 = vsel %vm105_vm2, %v94_v36, %v96_v37 }
  0x96   :  { %v115_v42 = vsel %vm114_vm3, %v106_v38, 0.0 }
  0x98   :  { %v98_v39 = vpop.permute.xlu0 %97  ;;  %v100_v40 = vpop.permute.xlu1 %99 }
  0x99   :  { %v107_v41 = vsel %vm105_vm2, %v96_v37, %v98_v39 }
  0x9a   :  { %v116_v43 = vsel %vm114_vm3, %v107_v41, 0.0 }
  0x9b   :  { %v117_v44 = vadd.f32 %v116_v43, %v115_v42 }
  0x9c   :  { %v102_v45 = vpop.permute.xlu0 %101  ;;  %v104_v46 = vpop.permute.xlu1 %103 }
  0x9d   :  { %v108_v47 = vsel %vm105_vm2, %v100_v40, %v102_v45  ;;  %v109_v48 = vsel %vm105_vm2, %v102_v45, %v104_v46  ;;  %118 = vadd.xlane.f32.xlu1 %v117_v44  ;;  %v227_v44 = vsub.s32 %v390_v54, %v393_v56 }
  0x9e   :  { %v120_v49 = vsel %vm114_vm3, %v108_v47, 0.0  ;;  %v121_v50 = vsel %vm114_vm3, %v109_v48, 0.0 }
  0x9f   :  { %v122_v51 = vadd.f32 %v121_v50, %v120_v49 }
  0xa1   :  { %123 = vadd.xlane.f32.xlu0 %v122_v51 }
  0xd6   :  { %v47_v53 = vpop.xlane.xlu0 %46 }
  0xd7   :  { %v139_v61 = vrot.slane %v47_v53, %v138_v58 }
  0xda   :  { %v41_v57 = vpop.xlane.xlu0 %40 }
  0xdb   :  { %v50_v59 = vpop.xlane.xlu1 %49  ;;  %v153_v12 = vrot.slane %v41_v57, %v152_v10  ;;  %v51_v25 = vadd.f32 %v47_v53, %v41_v57 }
  0xdc   :  { %v143_v62 = vrot.slane %v50_v59, %v138_v58 }
  0xde   :  { %v144_v4 = vsel %vm128_vm4, %v143_v62, %v139_v61 }
  0xdf   :  { %v44_v9 = vpop.xlane.xlu1 %43 }
  0xe0   :  { %v157_v13 = vrot.slane %v44_v9, %v152_v10  ;;  %v52_v29 = vadd.f32 %v50_v59, %v44_v9 }
  0xe2   :  { %v159_v17 = vsel %vm158_vm5, %v157_v13, %v153_v12 }
 0x11e   :  { %v90_v60 = vpop.xlane.xlu0 %89 }
 0x11f   :  { %v127_v63 = vrot.slane %v90_v60, 7 }
 0x122   :  { %v85_v2 = vpop.xlane.xlu0 %84 }
 0x123   :  { %v129_v3 = vsel %vm128_vm4, %v127_v63, %v85_v2 }
 0x124   :  { %v146_v5 = vsel %vm105_vm2, %v129_v3, %v144_v4 }
 0x125   :  { %v180_v7 = vrot.slane %v146_v5, %v397_v0  ;;  %v173_v8 = vrot.slane %v146_v5, %v172_v1 }
 0x127   :  { %182 = vbcast.lane.b32.xlu0 %v180_v7, 256  ;;  %175 = vbcast.lane.b32.xlu1 %v173_v8, 256 }
 0x12a   :  { %v119_v11 = vpop.xlane.xlu1 %118 }
 0x12b   :  { %v163_v15 = vrot.slane %v119_v11, 6 }
 0x12e   :  { %v124_v14 = vpop.xlane.xlu0 %123 }
 0x12f   :  { %v164_v16 = vrot.slane %v124_v14, 5 }
 0x131   :  { %v165_v18 = vsel %vm158_vm5, %v164_v16, %v163_v15 }
 0x132   :  { %v168_v19 = vsel %vm167_vm6, %v159_v17, %v165_v18 }
 0x133   :  { %v192_v20 = vrot.slane %v168_v19, %v397_v0  ;;  %v199_v23 = vrot.slane %v168_v19, %v198_v21 }
 0x135   :  { %194 = vbcast.lane.b32.xlu1 %v192_v20, 256 }
 0x139   :  { %201 = vbcast.lane.b32.xlu1 %v199_v23, 256 }
 0x199   :  { %v176_v24 = vpop.permute.xlu1 %175  ;;  %v183_v27 = vpop.permute.xlu0 %182 }
 0x19a   :  { %v186_v26 = vadd.f32 %v176_v24, %v51_v25  ;;  %v187_v31 = vadd.f32 %v183_v27, %v52_v29 }
 0x1a7   :  { %v195_v28 = vpop.permute.xlu1 %194 }
 0x1a8   :  { %v205_v30 = vadd.f32 %v195_v28, %v186_v26 }
 0x1aa   :  { %v207_v32 = vmul.f32 0.0009765625, %v205_v30 }
 0x1ab   :  { %v202_v33 = vpop.permute.xlu1 %201 }
 0x1ac   :  { %v209_v34 = vmax.f32 %v207_v32, 1e-06  ;;  %v206_v35 = vadd.f32 %v202_v33, %v187_v31 }
 0x1ae   :  { %303 = vlog2.f32 %v209_v34  ;;  %v208_v36 = vmul.f32 0.0009765625, %v206_v35 }
 0x1b0   :  { %v210_v37 = vmax.f32 %v208_v36, 1e-06 }
 0x1b2   :  { %305 = vlog2.f32 %v210_v37 }
 0x1b8   :  { %v304_v38 = vpop.eup %303 }
 0x1b9   :  { %v212_v39 = vmul.f32 0.6931472, %v304_v38 }
 0x1bb   :  { %v215_v40 = vmul.f32 4.3429446, %v212_v39 }
 0x1bc   :  { %v306_v41 = vpop.eup %305 }
 0x1bd   :  { %220 = vperm.xlu0 %301, %v215_v40   ;;  %v214_v42 = vmul.f32 0.6931472, %v306_v41  ;;  %v292_v57 = vadd.f32 60.0, %v215_v40 }
 0x1bf   :  { %v216_v43 = vmul.f32 4.3429446, %v214_v42 }
 0x1c1   :  { %223 = vperm.xlu1 %302, %v216_v43   ;;  %v293_v60 = vadd.f32 60.0, %v216_v43 }
 0x23c   :  { %v221_v45 = vpop.permute.xlu0 %220 }
 0x23d   :  { %v228_v47 = vrot.slane %v221_v45, %v227_v44 }
 0x240   :  { %v224_v46 = vpop.permute.xlu1 %223 }
 0x241   :  { %v232_v48 = vrot.slane %v224_v46, %v227_v44 }
 0x243   :  { %v233_v49 = vsel %vm128_vm4, %v232_v48, %v228_v47 }
 0x244   :  { %v236_v50 = vsel %vm235_vm7, %v233_v49, -inf }
 0x245   :  { %237 = vmax.xlane.f32.xlu1 %v236_v50 }
 0x2d2   :  { %v238_v51 = vpop.xlane.xlu1 %237 }
 0x2d3   :  { %v291_v52 = vadd.f32 60.0, %v238_v51 }
 0x2d5   :  { %v240_v53 = vadd.f32 1e-08, %v291_v52 }
 0x2d7   :  { %307 = vrcp.f32 %v240_v53 }
 0x2e1   :  { %v308_v55 = vpop.eup %307 }
 0x2e2   :  { %v248_v58 = vrot.slane %v308_v55, %v172_v1  ;;  %v252_v59 = vrot.slane %v308_v55, %v397_v0 }
 0x2e4   :  { %v255_v54 = vmul.f32 %v292_v57, %v248_v58  ;;  %v256_v61 = vmul.f32 %v293_v60, %v252_v59 }
 0x2e6   :  { %260 = vperm.xlu0 %301, %v255_v54  }
 0x2ea   :  { %263 = vperm.xlu0 %301, %v256_v61  }
 0x365   :  { %v261_v62 = vpop.permute.xlu0 %260 }
 0x366   :  { %v268_v2 = vrot.slane %v261_v62, %v227_v44 }
 0x369   :  { %v264_v63 = vpop.permute.xlu0 %263 }
 0x36a   :  { %v272_v3 = vrot.slane %v264_v63, %v227_v44 }
 0x36c   :  { %v273_v4 = vsel %vm128_vm4, %v272_v3, %v268_v2 }
 0x36d   :  { %275 = vst.msk [vmem:[#allocation5] sm:$0x3] %vm235_vm7, %v273_v4 }
 0x36e   :  { %342 = shalt.err (!%p339_p12)
}
 0x36f   :  { %s343_s26 = scalar_lea.hbm %s432_s1, 32 }
 0x370   :  { %p344_p13 = scmp.ne.s32.totalorder %s432_s1, %s343_s26  ;;  %p347_p0 = scmp.lt.u32.totalorder %s343_s26, %s432_s1 }
 0x372   :  { %p349_p1 = pnand %p347_p0, %p344_p13 }
 0x374   :  { %352 = shalt.err (!%p349_p1)
}
 0x375   :  { %285 = dma.vmem_to_hbm [thread:$0]  %s283_s22, 32, %s432_s1, [#allocation4]  }
 0x376   :  { %355 = dma.done.wait [#allocation4], 32  }
 0x377   :  { %356 = vsyncadd [#allocation4], 4294967264 }
 0x378   :  { %289 = vsyncpa [#allocation3], 1 }
 0x379   :  { %290 = vsyncpa [#allocation4], 1 }

</bundles_post_ra>
